<compile_context>
chip_gen: v7x
topology: tpu7x:2x2x1
jax: 0.10.0
libtpu: 0.0.40
codegen_flags: <defaults>
</compile_context>

<pallas_src>
import functools

import jax
import jax.numpy as jnp
from jax import lax
from jax.experimental import pallas as pl
from jax.experimental.pallas import tpu as pltpu


# ----------------------------- Pallas kernel --------------------------------

def _adain_kernel(x_ref, g_ref, b_ref, o_ref, *, eps, inv_hw):
    """(1 + gamma) * InstanceNorm(x) + beta for one (channel-tile, HW) block.

    x_ref : (tc, HW) channel tile of one batch element (spatial on lanes)
    g_ref : (tc, 1)  precomputed 1 + gamma for this (batch, channel tile)
    b_ref : (tc, 1)  precomputed beta
    o_ref : (tc, HW)
    """
    x = x_ref[...].astype(jnp.float32)                        # (tc, HW)

    # Single-pass statistics from one read of the block.
    mean = jnp.sum(x, axis=1, keepdims=True) * inv_hw         # (tc, 1)
    ex2 = jnp.sum(x * x, axis=1, keepdims=True) * inv_hw      # (tc, 1)
    var = jnp.maximum(ex2 - mean * mean, 0.0)                 # clamp cancellation
    inv_std = lax.rsqrt(var + eps)                            # EUP slot

    scale = g_ref[...] * inv_std                              # (tc, 1)
    shift = b_ref[...] - mean * scale                         # (tc, 1)
    o_ref[...] = (x * scale + shift).astype(o_ref.dtype)


# ------------------------------- wrapper -------------------------------------

def _pick_channel_tile(batch, c, hw, itemsize, *, budget_bytes=4 << 20,
                       min_steps=4):
    """Largest channel tile that divides C, respects the dtype sublane tile
    (or equals C), keeps one (tc, HW) block under `budget_bytes`, and — when
    possible — leaves at least `min_steps` grid steps so both v7x TensorCores
    stay busy and the DMA pipeline has work to overlap."""
    sub = {4: 8, 2: 16, 1: 32}.get(itemsize, 8)
    cands = [d for d in range(1, c + 1)
             if c % d == 0 and (d % sub == 0 or d == c)]
    fits = [d for d in cands if d * hw * itemsize <= budget_bytes]
    fed = [d for d in fits if batch * (c // d) >= min_steps]
    if fed:
        return max(fed)
    if fits:
        return max(fits)
    return min(cands)


def adain(x, s, fc_w, fc_b, *, eps=1e-5, channel_tile=None):
    """JAX/Pallas equivalent of AdaIN.forward.

    x    : (B, C, H, W) content features
    s    : (B, S)       style codes
    fc_w : (2C, S)      nn.Linear weight (PyTorch layout: out x in)
    fc_b : (2C,)        nn.Linear bias
    returns (B, C, H, W) in x.dtype: (1 + gamma) * InstanceNorm2d(x) + beta
    """
    B, C, H, W = x.shape
    S = s.shape[1]
    HW = H * W
    assert fc_w.shape == (2 * C, S) and fc_b.shape == (2 * C,)

    # Free reshape (NCHW is contiguous): spatial on the lane axis.
    x3 = x.reshape(B, C, HW)

    # Style fc hoisted to plain XLA (tiny matmul); pre-add the 1 to gamma.
    h = (s.astype(jnp.float32) @ fc_w.astype(jnp.float32).T
         + fc_b.astype(jnp.float32))                         # (B, 2C)
    gamma1 = (1.0 + h[:, :C]).reshape(B, C, 1)               # (B, C, 1) f32
    beta = h[:, C:].reshape(B, C, 1)                         # (B, C, 1) f32

    tc = channel_tile or _pick_channel_tile(B, C, HW, x.dtype.itemsize)
    assert C % tc == 0

    # Explicit VMEM budget: in + out double-buffered blocks plus headroom,
    # clamped to a value safe on every generation (v5e scoped default is only
    # 16 MiB; v7x physical VMEM is 64 MiB with a 32 MiB scoped default).
    block_bytes = tc * HW * x.dtype.itemsize
    vmem_limit = int(min(max(4 * block_bytes + (4 << 20), 16 << 20), 32 << 20))

    # TODO(synk): extremely large H*W (block > a few MiB per channel tile)
    # would need an in-kernel spatial fori_loop accumulating sum/sumsq; blocks
    # here keep the full spatial extent, which covers typical AdaIN maps.
    # TODO(synk): if H*W is not a multiple of 128, pad the spatial axis in the
    # wrapper for unmasked lane-dense stores (perf only; correctness is fine).
    grid = (B, C // tc)
    kernel = functools.partial(_adain_kernel, eps=eps, inv_hw=1.0 / HW)
    out = pl.pallas_call(
        kernel,
        out_shape=jax.ShapeDtypeStruct((B, C, HW), x.dtype),
        grid_spec=pltpu.PrefetchScalarGridSpec(
            num_scalar_prefetch=0,
            grid=grid,
            in_specs=[
                pl.BlockSpec((None, tc, HW), lambda b, j: (b, j, 0)),  # x tile
                pl.BlockSpec((None, tc, 1), lambda b, j: (b, j, 0)),   # 1+gamma
                pl.BlockSpec((None, tc, 1), lambda b, j: (b, j, 0)),   # beta
            ],
            out_specs=pl.BlockSpec((None, tc, HW), lambda b, j: (b, j, 0)),
        ),
        compiler_params=pltpu.CompilerParams(
            dimension_semantics=("parallel", "parallel"),
            vmem_limit_bytes=vmem_limit),
    )(x3, gamma1, beta)
    return out.reshape(B, C, H, W)


# ------------------------------ reference ------------------------------------

def adain_reference(x, s, fc_w, fc_b, eps=1e-5):
    """Pure-JAX reference mirroring the PyTorch module."""
    B, C, H, W = x.shape
    h = s @ fc_w.T + fc_b                         # (B, 2C)
    gamma = h[:, :C][:, :, None, None]
    beta = h[:, C:][:, :, None, None]
    mean = jnp.mean(x, axis=(2, 3), keepdims=True)
    var = jnp.var(x, axis=(2, 3), keepdims=True)  # biased, like InstanceNorm2d
    xn = (x - mean) / jnp.sqrt(var + eps)
    return (1.0 + gamma) * xn + beta


# --------------------------------- main ---------------------------------------

if __name__ == "__main__":
    key = jax.random.PRNGKey(0)

    B, C, H, W = 2, 64, 16, 16       # (batch, num_features, spatial, spatial)
    S = 64                            # style_dim

    kx, ks, kw, kb = jax.random.split(key, 4)
    x = jax.random.normal(kx, (B, C, H, W), jnp.float32)
    s = jax.random.normal(ks, (B, S), jnp.float32)
    fc_w = 0.05 * jax.random.normal(kw, (2 * C, S), jnp.float32)
    fc_b = 0.01 * jax.random.normal(kb, (2 * C,), jnp.float32)

    out = adain(x, s, fc_w, fc_b)
    jax.block_until_ready(out)

    ref = adain_reference(x, s, fc_w, fc_b)
    assert out.shape == (B, C, H, W)
    assert out.dtype == x.dtype
    max_err = float(jnp.max(jnp.abs(out.astype(jnp.float32) - ref)))
    assert max_err < 2e-3, f"max abs error vs reference: {max_err}"

    print("KERNEL_OK")
</pallas_src>

<mosaic_0001>
module attributes {stable_mosaic.version = 11 : i64} {
  func.func @_adain_kernel(%arg0: i32, %arg1: i32, %arg2: memref<1x32x256xf32, #tpu.memory_space<vmem>>, %arg3: memref<1x32x1xf32, #tpu.memory_space<vmem>>, %arg4: memref<1x32x1xf32, #tpu.memory_space<vmem>>, %arg5: memref<1x32x256xf32, #tpu.memory_space<vmem>>) attributes {dimension_semantics = [#tpu.dimension_semantics<parallel>, #tpu.dimension_semantics<parallel>], iteration_bounds = array<i64: 2, 2>, scalar_prefetch = 0 : i64, scratch_operands = 0 : i64, tpu.core_type = #tpu.core_type<tc>, window_params = [{transform_indices = @transform_0, window_bounds = array<i64: 1, 32, 256>}, {transform_indices = @transform_1, window_bounds = array<i64: 1, 32, 1>}, {transform_indices = @transform_2, window_bounds = array<i64: 1, 32, 1>}, {transform_indices = @transform_3, window_bounds = array<i64: 1, 32, 256>}]} {
    %c0 = arith.constant 0 : index
    %c0_0 = arith.constant 0 : index
    %c0_1 = arith.constant 0 : index
    %0 = vector.load %arg2[%c0, %c0_0, %c0_1] : memref<1x32x256xf32, #tpu.memory_space<vmem>>, vector<1x32x256xf32>
    %1 = vector.shape_cast %0 : vector<1x32x256xf32> to vector<32x256xf32>
    %cst = arith.constant dense<0.000000e+00> : vector<32xf32>
    %2 = vector.multi_reduction <add>, %1, %cst [1] : vector<32x256xf32> to vector<32xf32>
    %3 = vector.shape_cast %2 : vector<32xf32> to vector<32x1xf32>
    %cst_2 = arith.constant 3.906250e-03 : f32
    %4 = vector.broadcast %cst_2 : f32 to vector<32x1xf32>
    %5 = arith.mulf %3, %4 : vector<32x1xf32>
    %6 = arith.mulf %1, %1 : vector<32x256xf32>
    %cst_3 = arith.constant dense<0.000000e+00> : vector<32xf32>
    %7 = vector.multi_reduction <add>, %6, %cst_3 [1] : vector<32x256xf32> to vector<32xf32>
    %8 = vector.shape_cast %7 : vector<32xf32> to vector<32x1xf32>
    %cst_4 = arith.constant 3.906250e-03 : f32
    %9 = vector.broadcast %cst_4 : f32 to vector<32x1xf32>
    %10 = arith.mulf %8, %9 : vector<32x1xf32>
    %11 = arith.mulf %5, %5 : vector<32x1xf32>
    %12 = arith.subf %10, %11 : vector<32x1xf32>
    %cst_5 = arith.constant 0.000000e+00 : f32
    %13 = vector.broadcast %cst_5 : f32 to vector<32x1xf32>
    %14 = arith.maximumf %12, %13 : vector<32x1xf32>
    %cst_6 = arith.constant 9.99999974E-6 : f32
    %15 = vector.broadcast %cst_6 : f32 to vector<32x1xf32>
    %16 = arith.addf %14, %15 : vector<32x1xf32>
    %17 = math.rsqrt %16 : vector<32x1xf32>
    %c0_7 = arith.constant 0 : index
    %c0_8 = arith.constant 0 : index
    %c0_9 = arith.constant 0 : index
    %18 = vector.load %arg3[%c0_7, %c0_8, %c0_9] : memref<1x32x1xf32, #tpu.memory_space<vmem>>, vector<1x32x1xf32>
    %19 = vector.shape_cast %18 : vector<1x32x1xf32> to vector<32x1xf32>
    %20 = arith.mulf %19, %17 : vector<32x1xf32>
    %c0_10 = arith.constant 0 : index
    %c0_11 = arith.constant 0 : index
    %c0_12 = arith.constant 0 : index
    %21 = vector.load %arg4[%c0_10, %c0_11, %c0_12] : memref<1x32x1xf32, #tpu.memory_space<vmem>>, vector<1x32x1xf32>
    %22 = vector.shape_cast %21 : vector<1x32x1xf32> to vector<32x1xf32>
    %23 = arith.mulf %5, %20 : vector<32x1xf32>
    %24 = arith.subf %22, %23 : vector<32x1xf32>
    %25 = vector.broadcast %20 : vector<32x1xf32> to vector<32x256xf32>
    %26 = arith.mulf %1, %25 : vector<32x256xf32>
    %27 = vector.broadcast %24 : vector<32x1xf32> to vector<32x256xf32>
    %28 = arith.addf %26, %27 : vector<32x256xf32>
    %c0_13 = arith.constant 0 : index
    %c0_14 = arith.constant 0 : index
    %c0_15 = arith.constant 0 : index
    %29 = vector.load %arg5[%c0_13, %c0_14, %c0_15] : memref<1x32x256xf32, #tpu.memory_space<vmem>>, vector<1x32x256xf32>
    %30 = vector.shape_cast %29 : vector<1x32x256xf32> to vector<32x256xf32>
    %31 = vector.shape_cast %28 : vector<32x256xf32> to vector<1x32x256xf32>
    tpu.vector_store %arg5[%c0_13, %c0_14, %c0_15], %31 {strides = array<i32>} : memref<1x32x256xf32, #tpu.memory_space<vmem>>, vector<1x32x256xf32>,
    return
  }
  func.func @transform_0(%arg0: i32, %arg1: i32) -> (i32, i32, i32) {
    %c0_i32 = arith.constant 0 : i32
    %c0_i32_0 = arith.constant 0 : i32
    return %arg0, %arg1, %c0_i32 : i32, i32, i32
  }
  func.func @transform_1(%arg0: i32, %arg1: i32) -> (i32, i32, i32) {
    %c0_i32 = arith.constant 0 : i32
    %c0_i32_0 = arith.constant 0 : i32
    return %arg0, %arg1, %c0_i32 : i32, i32, i32
  }
  func.func @transform_2(%arg0: i32, %arg1: i32) -> (i32, i32, i32) {
    %c0_i32 = arith.constant 0 : i32
    %c0_i32_0 = arith.constant 0 : i32
    return %arg0, %arg1, %c0_i32 : i32, i32, i32
  }
  func.func @transform_3(%arg0: i32, %arg1: i32) -> (i32, i32, i32) {
    %c0_i32 = arith.constant 0 : i32
    %c0_i32_0 = arith.constant 0 : i32
    return %arg0, %arg1, %c0_i32 : i32, i32, i32
  }
}

</mosaic_0001>

<bundles_post_ra>
// kernel: tpu_custom_call.1
= control target key start
LH: loop header
LB: loop body
LE: loop exit
PB: predicated region body
PF: predicated region fallthrough
CT: control target
= control target key end

     0   :  { %8 = vsyncpa [#allocation3], 0  ;;  %s1001_s0 = inlined_call_operand.vmem [shape: f32[2,64,256], index: 0, kind: input, shape index: {}]   ;;  %s1002_s1 = inlined_call_operand.vmem [shape: f32[2,64,1], index: 1, kind: input, shape index: {}]   ;;  %s1003_s2 = inlined_call_operand.vmem [shape: f32[2,64,1], index: 2, kind: input, shape index: {}]   ;;  %s1004_s3 = inlined_call_operand.hbm [shape: f32[2,64,256], index: 3, kind: output, shape index: {}]  }
   0x1   :  { %10 = vsyncpa [#allocation3 + $0x1], 0  ;;  %s793_s12 = smov 0   ;;  %s795_s13 = smov 0  }
   0x2   :  { %s797_s14 = smov 0   ;;  %s799_s15 = smov 0  }
   0x3   :  { %s801_s16 = smov 0   ;;  %s803_s17 = smov 0  }
   0x4   :  { %s805_s18 = smov 0   ;;  %s807_s19 = smov 0  }
   0x5 LB: > { %s565_s20 = sadd.s32 4294967295, %s767_s19   ;;  %s566_s21 = sadd.s32 4294967294, %s767_s19   ;;  %s767_s19 = sphi %s807_s19, %s16_s19   ;;  %s763_s18 = sphi %s805_s18, %s1013_s18   ;;  %s759_s17 = sphi %s803_s17, %s1012_s17   ;;  %s755_s16 = sphi %s801_s16, %s1011_s16   ;;  %s751_s15 = sphi %s799_s15, %s1010_s15   ;;  %s747_s14 = sphi %s797_s14, %s1009_s14   ;;  %s743_s13 = sphi %s795_s13, %s1008_s13   ;;  %s739_s12 = sphi %s793_s12, %s1007_s12  }
   0x6   : > { %s25_s22 = sadd.s32 1, %s759_s17  ;;  %s28_s23 = sadd.s32 1, %s763_s18 }
   0x7   : > { %p26_p0 = scmp.ge.s32.totalorder %s25_s22, 2  ;;  %p131_p1 = scmp.ne.s32.totalorder %s747_s14, %s743_s13 }
   0x8   : > { %p132_p2 = scmp.eq.s32.totalorder %s565_s20, 3  ;;  %p137_p5 = scmp.ne.s32.totalorder %s743_s13, %s739_s12 }
   0x9   : > { %s1015_s22 = smov (%p26_p0, %s25_s22), 0  ;;  %s1017_s23 = smov (!%p26_p0, %s28_s23), %s763_s18 }
   0xa   : > { %s117_s24 = ssub.s32 %s759_s17, %s1015_s22  ;;  %p844_p3 = por %p132_p2, %p131_p1 }
   0xb   : > { %p30_p4 = scmp.ge.s32.totalorder %s1017_s23, 2  ;;  %p138_p6 = scmp.eq.s32.totalorder %s566_s21, 3 }
   0xc   : > { %p569_p7 = scmp.ge.s32.totalorder %s767_s19, 1  ;;  %p196_p9 = scmp.lt.s32.totalorder %s767_s19, 5 }
   0xd   : > { %s1019_s23 = smov (%p30_p4, %s1017_s23), 0  ;;  %p853_p8 = por %p138_p6, %p137_p5 }
   0xe   : > { %s116_s27 = ssub.s32 %s763_s18, %s1019_s23  ;;  %s121_s28 = sadd.s32 1, %s747_s14 }
   0xf   : > { %s118_s29 = sor.u32 %s117_s24, %s116_s27  ;;  %p197_p10 = pnand %p569_p7, %p196_p9 }
  0x10   : > { %p119_p11 = scmp.eq.s32.totalorder %s118_s29, 0  ;;  %s571_s4 = sshll.u32 (!%p197_p10), %s751_s15, 2  ;;  %v769_v24 = vmov (!%p197_p10), 0  }
  0x11   : > { %200 = sbr.rel (%p197_p10) target bundleno = 374 (0x176), region = 32  ;;  %p244_p12 = scmp.lt.s32.totalorder (!%p197_p10), %s755_s16, 1  ;;  %664 = vset.pattern.permute.xlu1 (!%p197_p10), %v769_v24  ;;  %663 = vset.pattern.permute.xlu0 (!%p197_p10), %v769_v24 }
  0x12   : > { %s862_s30 = scalar_select %p119_p11, %s747_s14, %s121_s28  }
  0x13   : > { %p246_p13 = scmp.lt.s32.totalorder (!%p197_p10), %s571_s4, 7  ;;  %s588_s11 = sshll.u32 (!%p197_p10), %s751_s15, 3 }
  0x18   : > { %s867_s5 = scalar_select %p244_p12, %s755_s16, 1 }
  0x19   : > { %s1021_s4 = smov (!%p246_p13, %s571_s4), 7 }
  0x1a   : > { %s573_s6 = sshll.u32 %s867_s5, 4  ;;  %s572_s7 = sshll.u32 %s1021_s4, 1 }
  0x1b   : > { %s250_s8 = sadd.s32 %s573_s6, %s572_s7  ;;  %s576_s21 = sshll.u32 %s867_s5, 3 }
  0x1c   : > { %s574_s9 = sshll.u32 %s250_s8, 3  ;;  %s918_s24 = sadd.s32 %s576_s21, %s1021_s4 }
  0x1d   : > { %s252_s20 = scalar_lea.vmem %s1001_s0, %s574_s9  ;;  %s577_s27 = sshll.u32 %s918_s24, 3 }
  0x1e   : > { %v876_v0 = vld [vmem:[%s252_s20 + $0x20] sm:$0xff]  ;;  %v878_v1 = vld [vmem:[%s252_s20 + $0x28] sm:$0xff]  ;;  %v886_v5 = vld [vmem:[%s252_s20 + $0x30] sm:$0xff]  ;;  %s262_s4 = scalar_lea.vmem %s1002_s1, %s577_s27  ;;  %s272_s7 = scalar_lea.vmem %s1003_s2, %s577_s27 }
  0x1f   : > { %v880_v2 = vld [vmem:[%s252_s20] sm:$0xff]  ;;  %v289_v3 = vadd.f32 %v878_v1, %v876_v0  ;;  %v884_v4 = vld [vmem:[%s252_s20 + $0x8] sm:$0xff]  ;;  %v888_v6 = vld [vmem:[%s252_s20 + $0x38] sm:$0xff]  ;;  %v305_v17 = vmul.f32 %v886_v5, %v886_v5  ;;  %v303_v20 = vmul.f32 %v876_v0, %v876_v0  ;;  %v304_v21 = vmul.f32 %v878_v1, %v878_v1  ;;  %s240_s8 = sand.u32 1, %s743_s13   ;;  %s770_s5 = smov [#allocation2]  }
  0x20   : > { %v283_v7 = vadd.f32 %v884_v4, %v880_v2  ;;  %v892_v8 = vld [vmem:[%s252_s20 + $0x10] sm:$0xff]  ;;  %v894_v9 = vld [vmem:[%s252_s20 + $0x18] sm:$0xff]  ;;  %v292_v10 = vadd.f32 %v888_v6, %v886_v5  ;;  %v299_v14 = vmul.f32 %v880_v2, %v880_v2  ;;  %v300_v15 = vmul.f32 %v884_v4, %v884_v4  ;;  %v344_v57 = vld [vmem:[%s262_s4 + $0x8] sm:$0xff]  ;;  %s570_s9 = sshll.u32 %s240_s8, 6  ;;  %s584_s20 = sshll.u32 %s755_s16, 4 }
  0x21   : > { %290 = vadd.xlane.f32.xlu1 %v289_v3  ;;  %v301_v11 = vmul.f32 %v892_v8, %v892_v8  ;;  %v302_v12 = vmul.f32 %v894_v9, %v894_v9  ;;  %v286_v13 = vadd.f32 %v894_v9, %v892_v8  ;;  %v306_v18 = vmul.f32 %v888_v6, %v888_v6  ;;  %v343_v58 = vld [vmem:[%s262_s4] sm:$0xff]  ;;  %v345_v63 = vld [vmem:[%s262_s4 + $0x10] sm:$0xff]  ;;  %s242_s10 = scalar_lea.vmem [#allocation2], %s570_s9  ;;  %s441_s21 = sadd.s32 %s588_s11, %s584_s20 }
  0x22   : > { %284 = vadd.xlane.f32.xlu0 %v283_v7  ;;  %v307_v19 = vadd.f32 %v300_v15, %v299_v14  ;;  %v313_v23 = vadd.f32 %v304_v21, %v303_v20  ;;  %v351_v14 = vld [vmem:[%s272_s7] sm:$0xff]  ;;  %v353_v20 = vld [vmem:[%s272_s7 + $0x10] sm:$0xff]  ;;  %s585_s24 = sshll.u32 %s441_s21, 7  ;;  %s444_s27 = sshll.u32 %s242_s10, 4  ;;  %s945_s27 = int_to_ptr.vmem [resolvable:$true] %s444_s27 }
  0x23   : > { %v310_v16 = vadd.f32 %v302_v12, %v301_v11  ;;  %v316_v22 = vadd.f32 %v306_v18, %v305_v17  ;;  %v346_v11 = vld [vmem:[%s262_s4 + $0x18] sm:$0xff]  ;;  %v352_v17 = vld [vmem:[%s272_s7 + $0x8] sm:$0xff]  ;;  %s943_s28 = scalar_lea.hbm %s1004_s3, %s585_s24  ;;  %s949_s29 = scalar_lea.sflag [#allocation3], %s240_s8 }
  0x24   : > { %s673_s4 = scalar_lea.vmem %s945_s27, 1024  ;;  %s677_s6 = sshll.u32 %s770_s5, 4  ;;  %s678_s6 = int_to_ptr.vmem [resolvable:$false] %s677_s6 }
  0x25   : > { %293 = vadd.xlane.f32.xlu1 %v292_v10  ;;  %p674_p0 = scmp.ne.s32.totalorder %s945_s27, %s673_s4  ;;  %p680_p4 = scmp.lt.s32.totalorder %s945_s27, %s678_s6 }
  0x26   : > { %287 = vadd.xlane.f32.xlu0 %v286_v13 }
  0x27   : > { %p675_p1 = pnand %p674_p0, %p844_p3 }
  0x29   : > { %311 = vadd.xlane.f32.xlu1 %v310_v16  ;;  %p676_p2 = pneg %p675_p1 }
  0x2a   : > { %308 = vadd.xlane.f32.xlu0 %v307_v19 }
  0x2d   : > { %317 = vadd.xlane.f32.xlu1 %v316_v22 }
  0x2e   : > { %314 = vadd.xlane.f32.xlu0 %v313_v23  ;;  %v354_v23 = vld [vmem:[%s272_s7 + $0x18] sm:$0xff]  ;;  %s679_s7 = scalar_lea.vmem %s678_s6, 2048 }
  0x2f   : > { %p681_p5 = scmp.lt.s32.totalorder %s679_s7, %s673_s4 }
  0x31   : > { %p682_p6 = por %p681_p5, %p680_p4 }
  0x33   : > { %p683_p7 = pnand %p682_p6, %p676_p2 }
  0xae   : > { %v291_v25 = vpop.xlane.xlu1 %290 }
  0xaf   : > { %v285_v26 = vpop.xlane.xlu0 %284  ;;  %v297_v36 = vmul.f32 0.00390625, %v291_v25 }
  0xb0   : > { %v295_v29 = vmul.f32 0.00390625, %v285_v26 }
  0xb1   : > { %v325_v46 = vmul.f32 %v297_v36, %v297_v36 }
  0xb2   : > { %v294_v27 = vpop.xlane.xlu1 %293  ;;  %v323_v37 = vmul.f32 %v295_v29, %v295_v29 }
  0xb3   : > { %v288_v28 = vpop.xlane.xlu0 %287  ;;  %v298_v32 = vmul.f32 0.00390625, %v294_v27 }
  0xb4   : > { %v296_v30 = vmul.f32 0.00390625, %v288_v28 }
  0xb5   : > { %v326_v42 = vmul.f32 %v298_v32, %v298_v32 }
  0xb6   : > { %v312_v31 = vpop.xlane.xlu1 %311  ;;  %v324_v33 = vmul.f32 %v296_v30, %v296_v30 }
  0xb7   : > { %v320_v34 = vmul.f32 0.00390625, %v312_v31  ;;  %v309_v35 = vpop.xlane.xlu0 %308 }
  0xb8   : > { %v319_v38 = vmul.f32 0.00390625, %v309_v35 }
  0xb9   : > { %v328_v39 = vsub.f32 %v320_v34, %v324_v33 }
  0xba   : > { %v327_v40 = vsub.f32 %v319_v38, %v323_v37  ;;  %v318_v41 = vpop.xlane.xlu1 %317 }
  0xbb   : > { %v332_v43 = vmax.f32 %v328_v39, 0.0  ;;  %v322_v44 = vmul.f32 0.00390625, %v318_v41  ;;  %v315_v45 = vpop.xlane.xlu0 %314 }
  0xbc   : > { %v331_v47 = vmax.f32 %v327_v40, 0.0  ;;  %v321_v48 = vmul.f32 0.00390625, %v315_v45 }
  0xbd   : > { %v336_v49 = vadd.f32 1e-05, %v332_v43  ;;  %v330_v50 = vsub.f32 %v322_v44, %v326_v42 }
  0xbe   : > { %v335_v51 = vadd.f32 1e-05, %v331_v47  ;;  %v329_v52 = vsub.f32 %v321_v48, %v325_v46 }
  0xbf   : > { %665 = vrsqrt.f32 %v336_v49  ;;  %v334_v53 = vmax.f32 %v330_v50, 0.0 }
  0xc0   : > { %667 = vrsqrt.f32 %v335_v51  ;;  %v333_v54 = vmax.f32 %v329_v52, 0.0 }
  0xc1   : > { %v338_v55 = vadd.f32 1e-05, %v334_v53 }
  0xc2   : > { %v337_v56 = vadd.f32 1e-05, %v333_v54 }
  0xc4   : > { %669 = vrsqrt.f32 %v337_v56 }
  0xc5   : > { %671 = vrsqrt.f32 %v338_v55 }
  0xc9   : > { %v666_v59 = vpop.eup %665 }
  0xca   : > { %v668_v60 = vpop.eup %667  ;;  %v348_v61 = vmul.f32 %v666_v59, %v344_v57 }
  0xcb   : > { %v347_v62 = vmul.f32 %v668_v60, %v343_v58 }
  0xcc   : > { %370 = vperm.xlu1 %664, %v348_v61   ;;  %v356_v16 = vmul.f32 %v348_v61, %v296_v30 }
  0xcd   : > { %365 = vperm.xlu0 %663, %v347_v62   ;;  %v355_v13 = vmul.f32 %v347_v62, %v295_v29 }
  0xce   : > { %v670_v3 = vpop.eup %669  ;;  %v360_v18 = vsub.f32 %v352_v17, %v356_v16 }
  0xcf   : > { %v349_v7 = vmul.f32 %v670_v3, %v345_v63  ;;  %v672_v10 = vpop.eup %671  ;;  %v359_v15 = vsub.f32 %v351_v14, %v355_v13 }
  0xd0   : > { %v350_v12 = vmul.f32 %v672_v10, %v346_v11 }
  0xd1   : > { %375 = vperm.xlu1 %664, %v349_v7   ;;  %v357_v19 = vmul.f32 %v349_v7, %v297_v36 }
  0xd2   : > { %v358_v22 = vmul.f32 %v350_v12, %v298_v32 }
  0xd3   : > { %v361_v21 = vsub.f32 %v353_v20, %v357_v19 }
  0xd4   : > { %v362_v24 = vsub.f32 %v354_v23, %v358_v22 }
  0xd5   : > { %380 = vperm.xlu1 %664, %v350_v12  }
  0xd9   : > { %393 = vperm.xlu1 %664, %v359_v15  }
  0xdd   : > { %398 = vperm.xlu1 %664, %v360_v18  }
  0xe1   : > { %403 = vperm.xlu1 %664, %v361_v21  }
  0xe5   : > { %408 = vperm.xlu1 %664, %v362_v24  }
 0x14b   : > { %v371_v25 = vpop.permute.xlu1 %370 }
 0x14c   : > { %v366_v27 = vpop.permute.xlu0 %365  ;;  %v385_v34 = vmul.f32 %v371_v25, %v892_v8  ;;  %v386_v35 = vmul.f32 %v371_v25, %v894_v9 }
 0x14d   : > { %v383_v29 = vmul.f32 %v366_v27, %v880_v2  ;;  %v384_v30 = vmul.f32 %v366_v27, %v884_v4 }
 0x150   : > { %v376_v26 = vpop.permute.xlu1 %375 }
 0x151   : > { %v387_v2 = vmul.f32 %v376_v26, %v876_v0  ;;  %v388_v4 = vmul.f32 %v376_v26, %v878_v1 }
 0x154   : > { %v381_v28 = vpop.permute.xlu1 %380 }
 0x155   : > { %v389_v9 = vmul.f32 %v381_v28, %v886_v5  ;;  %v390_v41 = vmul.f32 %v381_v28, %v888_v6 }
 0x158   : > { %v394_v31 = vpop.permute.xlu1 %393 }
 0x159   : > { %v411_v33 = vadd.f32 %v394_v31, %v383_v29  ;;  %v412_v32 = vadd.f32 %v394_v31, %v384_v30 }
 0x15b   : > { %419 = vst [vmem:[%s242_s10] sm:$0xff] %v411_v33  ;;  %420 = vst [vmem:[%s242_s10 + $0x8] sm:$0xff] %v412_v32 }
 0x15c   : > { %v399_v36 = vpop.permute.xlu1 %398 }
 0x15d   : > { %v413_v37 = vadd.f32 %v399_v36, %v385_v34  ;;  %v414_v38 = vadd.f32 %v399_v36, %v386_v35 }
 0x15f   : > { %421 = vst [vmem:[%s242_s10 + $0x10] sm:$0xff] %v413_v37  ;;  %422 = vst [vmem:[%s242_s10 + $0x18] sm:$0xff] %v414_v38 }
 0x160   : > { %v404_v39 = vpop.permute.xlu1 %403 }
 0x161   : > { %v415_v8 = vadd.f32 %v404_v39, %v387_v2  ;;  %v416_v40 = vadd.f32 %v404_v39, %v388_v4 }
 0x163   : > { %423 = vst [vmem:[%s242_s10 + $0x20] sm:$0xff] %v415_v8  ;;  %424 = vst [vmem:[%s242_s10 + $0x28] sm:$0xff] %v416_v40 }
 0x164   : > { %v409_v42 = vpop.permute.xlu1 %408 }
 0x165   : > { %v417_v0 = vadd.f32 %v409_v42, %v389_v9  ;;  %v418_v1 = vadd.f32 %v409_v42, %v390_v41 }
 0x167   : > { %425 = vst [vmem:[%s242_s10 + $0x30] sm:$0xff] %v417_v0  ;;  %426 = vst [vmem:[%s242_s10 + $0x38] sm:$0xff] %v418_v1 }
 0x168   : > { %686 = shalt.err (!%p683_p7)
}
 0x169   : > { %s687_s8 = scalar_lea.hbm %s943_s28, 1024  ;;  %s691_s11 = scalar_lea.hbm %s1004_s3, 4096 }
 0x16a   : > { %p688_p9 = scmp.ne.s32.totalorder %s943_s28, %s687_s8  ;;  %p692_p12 = scmp.lt.u32.totalorder %s943_s28, %s1004_s3 }
 0x16b   : > { %p693_p13 = scmp.lt.u32.totalorder %s691_s11, %s687_s8  ;;  %p695_p1 = scmp.lt.u32.totalorder %s687_s8, %s943_s28 }
 0x16c   : > { %p689_p10 = pnand %p688_p9, %p844_p3 }
 0x16d   : > { %p694_p0 = por %p693_p13, %p692_p12 }
 0x16e   : > { %p690_p11 = pneg %p689_p10 }
 0x16f   : > { %p696_p2 = por %p695_p1, %p694_p0 }
 0x171   : > { %p697_p4 = pnand %p696_p2, %p690_p11 }
 0x173   : > { %700 = shalt.err (!%p697_p4)
}
 0x174   : > { %s771_s24 = smov 256   ;;  %s772_s15 = smov 16  }
 0x175   : > { %589 = dma.vmem_to_hbm [thread:$0]  (%p844_p3), %s945_s27, 1024, %s943_s28, %s949_s29, %s771_s24, %s771_s24, %s772_s15  }
 0x176 PF: > { %p595_p5 = scmp.ge.s32.totalorder %s767_s19, 2  ;;  %s459_s16 = sand.u32 1, %s739_s12  }
 0x177   : > { %s460_s4 = scalar_lea.sflag [#allocation3], %s459_s16 }
 0x178   : > { %p592_p6 = pnand %p595_p5, %p853_p8 }
 0x17a   : > { %734 = dma.done.wait (!%p592_p6), %s460_s4, 1024  }
 0x17b   : > { %736 = vsyncadd (!%p592_p6), %s460_s4, 4294966272  ;;  %s16_s19 = sadd.s32 1, %s767_s19   ;;  %s1007_s12 = smov %s743_s13 }
 0x17c   : > { %p13_p7 = scmp.ge.s32.totalorder %s16_s19, 6   ;;  %s1008_s13 = smov %s747_s14 }
 0x17d   : > { %s1009_s14 = smov %s862_s30  ;;  %s1010_s15 = smov %s759_s17 }
 0x17e   : > { %s1011_s16 = smov %s763_s18  ;;  %s1012_s17 = smov %s1015_s22 }
 0x17f   : > { %s1013_s18 = smov %s1019_s23  ;;  %15 = sbr.rel (!%p13_p7) target bundleno = 5 (0x5), region = 73 }
 0x186   :  { %465 = vsyncpa [#allocation3], 1 }
 0x187   :  { %467 = vsyncpa [#allocation3 + $0x1], 1 }

</bundles_post_ra>
